<compile_context>
chip_gen: v6e
topology: v6e:2x2x1
jax: 0.10.0
libtpu: 0.0.40
codegen_flags: <defaults>
</compile_context>

<pallas_src>
import jax
import jax.numpy as jnp
import numpy as np
from jax.experimental import pallas as pl
from jax.experimental.pallas import tpu as pltpu

VOCAB = 256 * 4   # 1024 distinct byte codes
C_LEN = 4         # bytes per token


def _round_up(x, m):
    return ((x + m - 1) // m) * m


def byte_embedding_kernel(idx_ref, fused_ref, b_ref, o_ref):
    """One grid step over TN tokens.

    idx_ref   : (TN, 4)          int32, raw byte indices in [0, VOCAB)
    fused_ref : (4*VOCAB, 2E)    bf16, columns [0:E] = hi, [E:2E] = lo of the
                                 fused (embedding @ proj-slice) table
    b_ref     : (1, E)           f32 projection bias
    o_ref     : (TN, E)          f32 output
    """
    idx = idx_ref[...]                                   # (TN, 4)
    tn = idx.shape[0]
    e2 = fused_ref.shape[1]
    e = e2 // 2

    # Single hoisted (TN, VOCAB) iota, reused by all 4 byte positions.
    # (int32 for v5e portability; int16 packing is a possible v6e/v7x win.)
    iota = jax.lax.broadcasted_iota(jnp.int32, (tn, VOCAB), 1)

    acc = jnp.zeros((tn, e2), dtype=jnp.float32)
    for c in range(C_LEN):                               # static unroll
        # Per-block one-hot: one compare per byte position, no OR chain.
        # 0/1 are exact in bf16, so row selection stays exact.
        onehot = (iota == idx[:, c:c + 1]).astype(jnp.bfloat16)      # (TN, V)
        # bf16 MXU matmul against the static, tile-aligned table slice.
        acc = acc + jnp.dot(onehot,
                            fused_ref[c * VOCAB:(c + 1) * VOCAB, :],
                            preferred_element_type=jnp.float32)
    # Recombine hi + lo (near-f32 accuracy) and add the bias.
    o_ref[...] = acc[:, :e] + acc[:, e:] + b_ref[...]


def prepare_byte_embedding_params(table, weight, bias):
    """Fold the Linear into the embedding table; do this once per weight set.

    Returns:
      fused_hilo: (C_LEN*VOCAB, 2*E) bf16; columns [0:E]=hi, [E:2E]=lo of
                  fused[c*V + v, :] = table[v, :] @ W[:, c*E:(c+1)*E].T
      bias2d:     (1, E) f32
    """
    v, e = table.shape
    assert v == VOCAB
    w_t = weight.T                                       # (4E, E)
    parts = [
        jnp.dot(table, w_t[c * e:(c + 1) * e, :],
                precision=jax.lax.Precision.HIGHEST)
        for c in range(C_LEN)
    ]
    fused = jnp.concatenate(parts, axis=0).astype(jnp.float32)   # (4V, E)
    hi = fused.astype(jnp.bfloat16)
    lo = (fused - hi.astype(jnp.float32)).astype(jnp.bfloat16)
    fused_hilo = jnp.concatenate([hi, lo], axis=1)               # (4V, 2E)
    bias2d = bias.reshape(1, e).astype(jnp.float32)
    return fused_hilo, bias2d


def byte_embedding_forward(x_idx, fused_hilo, bias2d, *, tn=512):
    """x_idx: (bsz, seq_len, 4) int; returns (bsz, seq_len, E) f32."""
    bsz, seq_len, c_len = x_idx.shape
    assert c_len == C_LEN
    rows, e2 = fused_hilo.shape
    assert rows == C_LEN * VOCAB and e2 % 2 == 0
    e = e2 // 2
    n = bsz * seq_len

    idx2d = x_idx.reshape(n, C_LEN).astype(jnp.int32)

    # Token tiling: big tiles to amortize grid-step overhead, padded instead
    # of asserting divisibility; shrink so the grid has >= 2 steps when
    # possible (v7x megacore: both TensorCores get work).
    tn = max(8, min(tn, _round_up(n, 8)))
    tn = _round_up(tn, 8)
    while tn > 8 and pl.cdiv(n, tn) < 2:
        tn = _round_up(tn // 2, 8)
    n_pad = _round_up(n, tn)
    if n_pad != n:
        idx2d = jnp.pad(idx2d, ((0, n_pad - n), (0, 0)))

    flops = 2 * n_pad * (C_LEN * VOCAB) * e2
    bytes_accessed = (idx2d.size * 4 + fused_hilo.size * 2
                      + bias2d.size * 4 + n_pad * e * 4)

    out = pl.pallas_call(
        byte_embedding_kernel,
        out_shape=jax.ShapeDtypeStruct((n_pad, e), jnp.float32),
        grid=(n_pad // tn,),
        in_specs=[
            pl.BlockSpec((tn, C_LEN), lambda i: (i, 0)),
            # Grid-invariant blocks: DMA'd once, reused across all steps.
            pl.BlockSpec((C_LEN * VOCAB, e2), lambda i: (0, 0)),
            pl.BlockSpec((1, e), lambda i: (0, 0)),
        ],
        out_specs=pl.BlockSpec((tn, e), lambda i: (i, 0)),
        compiler_params=pltpu.CompilerParams(
            dimension_semantics=("parallel",),
            vmem_limit_bytes=32 * 1024 * 1024,
        ),
        cost_estimate=pl.CostEstimate(
            flops=flops, transcendentals=0, bytes_accessed=bytes_accessed),
    )(idx2d, fused_hilo, bias2d)
    return out[:n].reshape(bsz, seq_len, e)


def reference_forward(x_idx, table, weight, bias):
    """Pure-JAX reference mirroring the PyTorch module."""
    e = table.shape[1]
    emb = jnp.take(table, x_idx, axis=0)                    # (B, S, 4, E)
    b, s = x_idx.shape[0], x_idx.shape[1]
    flat = emb.reshape(b, s, C_LEN * e)
    return jnp.dot(flat, weight.T,
                   precision=jax.lax.Precision.HIGHEST) + bias


if __name__ == "__main__":
    embed_dim = 32
    bsz, seq_len = 2, 8

    key = jax.random.PRNGKey(0)
    k_idx, k_tab, k_w, k_b = jax.random.split(key, 4)

    # Deterministic parameter init (shapes match the PyTorch module).
    table = jax.random.normal(k_tab, (VOCAB, embed_dim), dtype=jnp.float32)
    weight = (jax.random.normal(k_w, (embed_dim, C_LEN * embed_dim),
                                dtype=jnp.float32)
              * (1.0 / np.sqrt(C_LEN * embed_dim)))
    bias = jax.random.normal(k_b, (embed_dim,), dtype=jnp.float32) * 0.01

    # Input byte indices.
    x_idx = jax.random.randint(k_idx, (bsz, seq_len, C_LEN), 0, VOCAB,
                               dtype=jnp.int32)

    # Fold the Linear into the table once (weights are static at inference).
    fused_hilo, bias2d = prepare_byte_embedding_params(table, weight, bias)

    y = byte_embedding_forward(x_idx, fused_hilo, bias2d)
    y = jax.block_until_ready(y)

    y_ref = reference_forward(x_idx, table, weight, bias)
    # bf16 hi/lo split + folded accumulation order: measured error ~1e-5.
    np.testing.assert_allclose(np.asarray(y), np.asarray(y_ref),
                               rtol=2e-4, atol=2e-4)
    assert y.shape == (bsz, seq_len, embed_dim)
    assert y.dtype == jnp.float32

    print("KERNEL_OK")
</pallas_src>

<mosaic_0001>
module attributes {stable_mosaic.version = 11 : i64} {
  func.func @byte_embedding_kernel(%arg0: i32, %arg1: memref<8x4xi32, #tpu.memory_space<vmem>>, %arg2: memref<4096x64xbf16, #tpu.memory_space<vmem>>, %arg3: memref<1x32xf32, #tpu.memory_space<vmem>>, %arg4: memref<8x32xf32, #tpu.memory_space<vmem>>) attributes {dimension_semantics = [#tpu.dimension_semantics<parallel>], iteration_bounds = array<i64: 2>, scalar_prefetch = 0 : i64, scratch_operands = 0 : i64, tpu.core_type = #tpu.core_type<tc>, window_params = [{transform_indices = @transform_0, window_bounds = array<i64: 8, 4>}, {pipeline_mode = #tpu.pipeline_mode<synchronous>, transform_indices = @transform_1, window_bounds = array<i64: 4096, 64>}, {pipeline_mode = #tpu.pipeline_mode<synchronous>, transform_indices = @transform_2, window_bounds = array<i64: 1, 32>}, {transform_indices = @transform_3, window_bounds = array<i64: 8, 32>}]} {
    %c0 = arith.constant 0 : index
    %c0_0 = arith.constant 0 : index
    %0 = vector.load %arg1[%c0, %c0_0] : memref<8x4xi32, #tpu.memory_space<vmem>>, vector<8x4xi32>
    %1 = tpu.iota {dimensions = array<i32: 1>} : vector<8x1024xi32>
    %cst = arith.constant 0.000000e+00 : f32
    %2 = vector.broadcast %cst : f32 to vector<8x64xf32>
    %3 = vector.extract_strided_slice %0 {offsets = [0, 0], sizes = [8, 1], strides = [1, 1]} : vector<8x4xi32> to vector<8x1xi32>
    %4 = vector.broadcast %3 : vector<8x1xi32> to vector<8x1024xi32>
    %5 = arith.cmpi eq, %1, %4 : vector<8x1024xi32>
    %6 = arith.extui %5 : vector<8x1024xi1> to vector<8x1024xi32>
    %7 = arith.sitofp %6 : vector<8x1024xi32> to vector<8x1024xf32>
    %8 = arith.truncf %7 : vector<8x1024xf32> to vector<8x1024xbf16>
    %c0_1 = arith.constant 0 : index
    %c0_2 = arith.constant 0 : index
    %9 = vector.load %arg2[%c0_1, %c0_2] : memref<4096x64xbf16, #tpu.memory_space<vmem>>, vector<1024x64xbf16>
    %cst_3 = arith.constant dense<0.000000e+00> : vector<8x64xf32>
    %10 = tpu.matmul %8, %9, %cst_3 {dimension_numbers = #tpu.dot_dimension_numbers<[1], [0], [0], [1], [0, 0, 1, 1], [], []>} : vector<8x1024xbf16>, vector<1024x64xbf16>, vector<8x64xf32> -> vector<8x64xf32>
    %11 = arith.addf %2, %10 : vector<8x64xf32>
    %12 = vector.extract_strided_slice %0 {offsets = [0, 1], sizes = [8, 1], strides = [1, 1]} : vector<8x4xi32> to vector<8x1xi32>
    %13 = vector.broadcast %12 : vector<8x1xi32> to vector<8x1024xi32>
    %14 = arith.cmpi eq, %1, %13 : vector<8x1024xi32>
    %15 = arith.extui %14 : vector<8x1024xi1> to vector<8x1024xi32>
    %16 = arith.sitofp %15 : vector<8x1024xi32> to vector<8x1024xf32>
    %17 = arith.truncf %16 : vector<8x1024xf32> to vector<8x1024xbf16>
    %c1024 = arith.constant 1024 : index
    %c0_4 = arith.constant 0 : index
    %18 = vector.load %arg2[%c1024, %c0_4] : memref<4096x64xbf16, #tpu.memory_space<vmem>>, vector<1024x64xbf16>
    %cst_5 = arith.constant dense<0.000000e+00> : vector<8x64xf32>
    %19 = tpu.matmul %17, %18, %cst_5 {dimension_numbers = #tpu.dot_dimension_numbers<[1], [0], [0], [1], [0, 0, 1, 1], [], []>} : vector<8x1024xbf16>, vector<1024x64xbf16>, vector<8x64xf32> -> vector<8x64xf32>
    %20 = arith.addf %11, %19 : vector<8x64xf32>
    %21 = vector.extract_strided_slice %0 {offsets = [0, 2], sizes = [8, 1], strides = [1, 1]} : vector<8x4xi32> to vector<8x1xi32>
    %22 = vector.broadcast %21 : vector<8x1xi32> to vector<8x1024xi32>
    %23 = arith.cmpi eq, %1, %22 : vector<8x1024xi32>
    %24 = arith.extui %23 : vector<8x1024xi1> to vector<8x1024xi32>
    %25 = arith.sitofp %24 : vector<8x1024xi32> to vector<8x1024xf32>
    %26 = arith.truncf %25 : vector<8x1024xf32> to vector<8x1024xbf16>
    %c2048 = arith.constant 2048 : index
    %c0_6 = arith.constant 0 : index
    %27 = vector.load %arg2[%c2048, %c0_6] : memref<4096x64xbf16, #tpu.memory_space<vmem>>, vector<1024x64xbf16>
    %cst_7 = arith.constant dense<0.000000e+00> : vector<8x64xf32>
    %28 = tpu.matmul %26, %27, %cst_7 {dimension_numbers = #tpu.dot_dimension_numbers<[1], [0], [0], [1], [0, 0, 1, 1], [], []>} : vector<8x1024xbf16>, vector<1024x64xbf16>, vector<8x64xf32> -> vector<8x64xf32>
    %29 = arith.addf %20, %28 : vector<8x64xf32>
    %30 = vector.extract_strided_slice %0 {offsets = [0, 3], sizes = [8, 1], strides = [1, 1]} : vector<8x4xi32> to vector<8x1xi32>
    %31 = vector.broadcast %30 : vector<8x1xi32> to vector<8x1024xi32>
    %32 = arith.cmpi eq, %1, %31 : vector<8x1024xi32>
    %33 = arith.extui %32 : vector<8x1024xi1> to vector<8x1024xi32>
    %34 = arith.sitofp %33 : vector<8x1024xi32> to vector<8x1024xf32>
    %35 = arith.truncf %34 : vector<8x1024xf32> to vector<8x1024xbf16>
    %c3072 = arith.constant 3072 : index
    %c0_8 = arith.constant 0 : index
    %36 = vector.load %arg2[%c3072, %c0_8] : memref<4096x64xbf16, #tpu.memory_space<vmem>>, vector<1024x64xbf16>
    %cst_9 = arith.constant dense<0.000000e+00> : vector<8x64xf32>
    %37 = tpu.matmul %35, %36, %cst_9 {dimension_numbers = #tpu.dot_dimension_numbers<[1], [0], [0], [1], [0, 0, 1, 1], [], []>} : vector<8x1024xbf16>, vector<1024x64xbf16>, vector<8x64xf32> -> vector<8x64xf32>
    %38 = arith.addf %29, %37 : vector<8x64xf32>
    %39 = vector.extract_strided_slice %38 {offsets = [0, 0], sizes = [8, 32], strides = [1, 1]} : vector<8x64xf32> to vector<8x32xf32>
    %40 = vector.extract_strided_slice %38 {offsets = [0, 32], sizes = [8, 32], strides = [1, 1]} : vector<8x64xf32> to vector<8x32xf32>
    %41 = arith.addf %39, %40 : vector<8x32xf32>
    %c0_10 = arith.constant 0 : index
    %c0_11 = arith.constant 0 : index
    %42 = vector.load %arg3[%c0_10, %c0_11] : memref<1x32xf32, #tpu.memory_space<vmem>>, vector<1x32xf32>
    %43 = vector.broadcast %42 : vector<1x32xf32> to vector<8x32xf32>
    %44 = arith.addf %41, %43 : vector<8x32xf32>
    %c0_12 = arith.constant 0 : index
    %c0_13 = arith.constant 0 : index
    %45 = vector.load %arg4[%c0_12, %c0_13] : memref<8x32xf32, #tpu.memory_space<vmem>>, vector<8x32xf32>
    tpu.vector_store %arg4[%c0_12, %c0_13], %44 {strides = array<i32>} : memref<8x32xf32, #tpu.memory_space<vmem>>, vector<8x32xf32>,
    return
  }
  func.func @transform_0(%arg0: i32) -> (i32, i32) {
    %c0_i32 = arith.constant 0 : i32
    %c0_i32_0 = arith.constant 0 : i32
    return %arg0, %c0_i32 : i32, i32
  }
  func.func @transform_1(%arg0: i32) -> (i32, i32) {
    %c0_i32 = arith.constant 0 : i32
    %c0_i32_0 = arith.constant 0 : i32
    %c0_i32_1 = arith.constant 0 : i32
    return %c0_i32, %c0_i32_0 : i32, i32
  }
  func.func @transform_2(%arg0: i32) -> (i32, i32) {
    %c0_i32 = arith.constant 0 : i32
    %c0_i32_0 = arith.constant 0 : i32
    %c0_i32_1 = arith.constant 0 : i32
    return %c0_i32, %c0_i32_0 : i32, i32
  }
  func.func @transform_3(%arg0: i32) -> (i32, i32) {
    %c0_i32 = arith.constant 0 : i32
    %c0_i32_0 = arith.constant 0 : i32
    return %arg0, %c0_i32 : i32, i32
  }
}

</mosaic_0001>

<bundles_post_ra>
// kernel: tpu_custom_call.1
= control target key start
LH: loop header
LB: loop body
LE: loop exit
PB: predicated region body
PF: predicated region fallthrough
CT: control target
= control target key end

     0   :  { %8 = vsyncpa [#allocation3], 0  ;;  %s5202_s0 = inlined_call_operand.vmem [shape: s32[16,4], index: 0, kind: input, shape index: {}]   ;;  %s5203_s1 = inlined_call_operand.vmem [shape: bf16[4096,64], index: 1, kind: input, shape index: {}]   ;;  %s5204_s2 = inlined_call_operand.vmem [shape: f32[1,32], index: 2, kind: input, shape index: {}]   ;;  %s5205_s3 = inlined_call_operand.hbm [shape: f32[16,32], index: 3, kind: output, shape index: {}]  }
   0x1   :  { %10 = vsyncpa [#allocation3 + $0x1], 0  ;;  %s4205_s12 = smov 0   ;;  %s4207_s13 = smov 0  }
   0x2   :  { %s4209_s14 = smov 0   ;;  %s4211_s15 = smov 0  }
   0x3 LB: > { %s4226_s16 = sadd.s32 4294967295, %s4176_s15   ;;  %s3095_s17 = sadd.s32 4294967294, %s4176_s15   ;;  %s4176_s15 = sphi %s4211_s15, %s5213_s15   ;;  %s4172_s14 = sphi %s4209_s14, %s5212_s14   ;;  %s4168_s13 = sphi %s4207_s13, %s5211_s13   ;;  %s4164_s12 = sphi %s4205_s12, %s5210_s12  }
   0x4   : > { %s4230_s18 = sadd.s32 1, %s4176_s15   ;;  %s91_s19 = sadd.s32 1, %s4172_s14 }
   0x5   : > { %s88_s20 = ssub.s32 %s4176_s15, %s4230_s18  ;;  %p101_p0 = scmp.ne.s32.totalorder %s4172_s14, %s4168_s13 }
   0x6   : > { %p89_p1 = scmp.eq.s32.totalorder %s88_s20, 0  ;;  %p102_p2 = scmp.eq.s32.totalorder %s4226_s16, 1 }
   0x7   : > { %p107_p3 = scmp.ne.s32.totalorder %s4168_s13, %s4164_s12  ;;  %p108_p4 = scmp.eq.s32.totalorder %s3095_s17, 1 }
   0x8   : > { %s4241_s21 = scalar_select %p89_p1, %s4172_s14, %s91_s19  }
   0x9   : > { %p4243_p5 = por %p102_p2, %p101_p0  ;;  %p4247_p6 = por %p108_p4, %p107_p3 }
   0xa   : > { %p3098_p7 = scmp.ge.s32.totalorder %s4176_s15, 1  ;;  %p139_p8 = scmp.lt.s32.totalorder %s4176_s15, 3 }
   0xc   : > { %p140_p9 = pnand %p3098_p7, %p139_p8 }
   0xd   : > { %p162_p10 = scmp.lt.s32.totalorder (!%p140_p9), %s4226_s16, 1  ;;  %s4183_s10 = smov (!%p140_p9), 96  }
   0xe   : > { %143 = sbr.rel (%p140_p9) target bundleno = 711 (0x2c7), region = 32  ;;  %s159_s11 = sand.u32 (!%p140_p9), 1, %s4168_s13  }
   0xf   : > { %s3099_s17 = sshll.u32 (!%p140_p9), %s159_s11, 3  ;;  %s3455_s24 = sshll.u32 (!%p140_p9), %s4226_s16, 7 }
  0x10   : > { %s161_s25 = scalar_lea.vmem (!%p140_p9), [#allocation2], %s3099_s17  ;;  %s3034_s29 = scalar_lea.hbm (!%p140_p9), %s5205_s3, %s3455_s24 }
  0x11   : > { %s3023_s30 = scalar_lea.sflag (!%p140_p9), [#allocation3], %s159_s11  ;;  %s4184_s5 = smov (!%p140_p9), [#allocation2]  }
  0x12   : > { %s4120_s6 = sshll.u32 (!%p140_p9), %s4184_s5, 4  ;;  %s4121_s6 = int_to_ptr.vmem [resolvable:$false] %s4120_s6 }
  0x13   : > { %v3860_v0 = vld [vmem:[%s5203_s1 + $0x278] sm:$0xff]   ;;  %v4178_v1 = vmov 1   ;;  %s163_s26 = scalar_select %p162_p10, %s4226_s16, 1  ;;  %v4179_v5 = vmov 2   ;;  %v3864_v6 = vld [vmem:[%s5203_s1 + $0x270] sm:$0xff]   ;;  %v3868_v11 = vld [vmem:[%s5203_s1 + $0x268] sm:$0xff]   ;;  %v168_v39 = vlaneseq }
  0x14   : > { %3855 = vset.pattern.permute.xlu0 %v4178_v1  ;;  %3458 = vmatprep.subr.bf16.mxu0 %v3860_v0  ;;  %v3861_v2 = vld [vmem:[%s5203_s1 + $0x2f8] sm:$0xff]   ;;  %v3865_v8 = vld [vmem:[%s5203_s1 + $0x2f0] sm:$0xff]   ;;  %v3869_v12 = vld [vmem:[%s5203_s1 + $0x2e8] sm:$0xff]   ;;  %v4180_v13 = vmov 0   ;;  %v4181_v38 = vmov 3   ;;  %s4122_s16 = scalar_lea.vmem %s4121_s6, 256 }
  0x15   : > { %v3862_v3 = vld [vmem:[%s5203_s1 + $0x238] sm:$0xff]   ;;  %s3100_s4 = sshll.u32 %s163_s26, 3  ;;  %3480 = vmatprep.subr.bf16.mxu1 %v3861_v2  ;;  %3857 = vset.pattern.permute.xlu1 %v4179_v5  ;;  %v3866_v9 = vld [vmem:[%s5203_s1 + $0x230] sm:$0xff]   ;;  %v3870_v14 = vld [vmem:[%s5203_s1 + $0x228] sm:$0xff]   ;;  %v4366_v40 = vand.u32 127, %v168_v39  ;;  %s3036_s26 = sshll.u32 %s161_s25, 4  ;;  %s3037_s26 = int_to_ptr.vmem [resolvable:$true] %s3036_s26 }
  0x16   : > { %v3863_v4 = vld [vmem:[%s5203_s1 + $0x2b8] sm:$0xff]   ;;  %s165_s9 = scalar_lea.vmem %s5202_s0, %s3100_s4  ;;  %3459 = vmatpush3.bf16.msra.mxu0 %v3862_v3  ;;  %v3867_v10 = vld [vmem:[%s5203_s1 + $0x2b0] sm:$0xff]   ;;  %v3871_v15 = vld [vmem:[%s5203_s1 + $0x2a8] sm:$0xff]   ;;  %v4182_v50 = vmov 1.0|1.0   ;;  %s4116_s4 = scalar_lea.vmem %s3037_s26, 128 }
  0x17   : > { %v4273_v7 = vld [vmem:[%s165_s9] sm:$0xff]  ;;  %3481 = vmatpush3.bf16.msra.mxu1 %v3863_v4  ;;  %3460 = vmatprep.subr.bf16.mxu0 %v3864_v6  ;;  %v3876_v20 = vld [vmem:[%s5203_s1 + $0x258] sm:$0xff]   ;;  %v3880_v24 = vld [vmem:[%s5203_s1 + $0x250] sm:$0xff]   ;;  %v4369_v41 = vadd.s32 128, %v4366_v40  ;;  %v4372_v42 = vadd.s32 384, %v4366_v40  ;;  %v4375_v43 = vadd.s32 256, %v4366_v40  ;;  %p4117_p11 = scmp.ne.s32.totalorder %s3037_s26, %s4116_s4  ;;  %p4123_p0 = scmp.lt.s32.totalorder %s3037_s26, %s4121_s6 }
  0x18   : > { %341 = vperm.xlu0 %3855, %v4273_v7   ;;  %3482 = vmatprep.subr.bf16.mxu1 %v3865_v8  ;;  %v3872_v16 = vld [vmem:[%s5203_s1 + $0x260] sm:$0xff]   ;;  %v3877_v21 = vld [vmem:[%s5203_s1 + $0x2d8] sm:$0xff]   ;;  %v3881_v25 = vld [vmem:[%s5203_s1 + $0x2d0] sm:$0xff]   ;;  %v4378_v44 = vadd.s32 640, %v4366_v40  ;;  %v4386_v47 = vadd.s32 896, %v4366_v40  ;;  %p4124_p1 = scmp.lt.s32.totalorder %s4122_s16, %s4116_s4 }
  0x19   : > { %1592 = vperm.xlu1 %3857, %v4273_v7   ;;  %v3873_v17 = vld [vmem:[%s5203_s1 + $0x2e0] sm:$0xff]   ;;  %v3878_v22 = vld [vmem:[%s5203_s1 + $0x218] sm:$0xff]   ;;  %v3882_v26 = vld [vmem:[%s5203_s1 + $0x210] sm:$0xff]   ;;  %p4118_p12 = pnand %p4117_p11, %p4243_p5 }
  0x1a   : > { %3461 = vmatpush3.bf16.msra.mxu0 %v3866_v9  ;;  %v3874_v18 = vld [vmem:[%s5203_s1 + $0x220] sm:$0xff]   ;;  %v3879_v23 = vld [vmem:[%s5203_s1 + $0x298] sm:$0xff]   ;;  %v3883_v27 = vld [vmem:[%s5203_s1 + $0x290] sm:$0xff]   ;;  %p4125_p2 = por %p4124_p1, %p4123_p0 }
  0x1b   : > { %3483 = vmatpush3.bf16.msra.mxu1 %v3867_v10  ;;  %3462 = vmatprep.subr.bf16.mxu0 %v3868_v11  ;;  %v3875_v19 = vld [vmem:[%s5203_s1 + $0x2a0] sm:$0xff]   ;;  %v3884_v28 = vld [vmem:[%s5203_s1 + $0x248] sm:$0xff]   ;;  %v3892_v36 = vld [vmem:[%s5203_s1 + $0x378] sm:$0xff]   ;;  %p4119_p13 = pneg %p4118_p12 }
  0x1c   : > { %3856 = vset.pattern.permute.xlu0 %v4180_v13  ;;  %3484 = vmatprep.subr.bf16.mxu1 %v3869_v12  ;;  %v3885_v29 = vld [vmem:[%s5203_s1 + $0x2c8] sm:$0xff]   ;;  %v3888_v32 = vld [vmem:[%s5203_s1 + $0x240] sm:$0xff]   ;;  %v3893_v37 = vld [vmem:[%s5203_s1 + $0x3f8] sm:$0xff]   ;;  %v4491_v13 = vadd.s32 512, %v4366_v40 }
  0x1d   : > { %178 = vperm.xlu0 %3856, %v4273_v7   ;;  %v3886_v30 = vld [vmem:[%s5203_s1 + $0x208] sm:$0xff]   ;;  %v3889_v33 = vld [vmem:[%s5203_s1 + $0x2c0] sm:$0xff]   ;;  %3858 = vset.pattern.permute.xlu1 %v4181_v38  ;;  %v3894_v46 = vld [vmem:[%s5203_s1 + $0x338] sm:$0xff]   ;;  %p4126_p3 = pnand %p4125_p2, %p4119_p13 }
  0x1e   : > { %3463 = vmatpush3.bf16.msra.mxu0 %v3870_v14  ;;  %v3887_v31 = vld [vmem:[%s5203_s1 + $0x288] sm:$0xff]   ;;  %v3890_v34 = vld [vmem:[%s5203_s1 + $0x200] sm:$0xff]   ;;  %2300 = vperm.xlu1 %3858, %v4273_v7   ;;  %v3895_v48 = vld [vmem:[%s5203_s1 + $0x3b8] sm:$0xff]  }
  0x1f   : > { %3485 = vmatpush3.bf16.msra.mxu1 %v3871_v15  ;;  %3464 = vmatprep.subr.bf16.mxu0 %v3872_v16  ;;  %v3891_v35 = vld [vmem:[%s5203_s1 + $0x280] sm:$0xff]   ;;  %v3896_v49 = vld [vmem:[%s5203_s1 + $0x370] sm:$0xff]   ;;  %v3900_v54 = vld [vmem:[%s5203_s1 + $0x368] sm:$0xff]   ;;  %v4497_v15 = vadd.s32 768, %v4366_v40 }
  0x20   : > { %3486 = vmatprep.subr.bf16.mxu1 %v3873_v17  ;;  %v3897_v51 = vld [vmem:[%s5203_s1 + $0x3f0] sm:$0xff]   ;;  %v3901_v55 = vld [vmem:[%s5203_s1 + $0x3e8] sm:$0xff]   ;;  %v3904_v58 = vld [vmem:[%s5203_s1 + $0x360] sm:$0xff]  }
  0x21   : > { %3859 = vset.pattern.permute.xlu0 %v4181_v38  ;;  %v3898_v52 = vld [vmem:[%s5203_s1 + $0x330] sm:$0xff]   ;;  %v3902_v56 = vld [vmem:[%s5203_s1 + $0x328] sm:$0xff]   ;;  %v3905_v59 = vld [vmem:[%s5203_s1 + $0x3e0] sm:$0xff]  }
  0x22   : > { %3465 = vmatpush3.bf16.msra.mxu0 %v3874_v18  ;;  %v3899_v53 = vld [vmem:[%s5203_s1 + $0x3b0] sm:$0xff]   ;;  %v3903_v57 = vld [vmem:[%s5203_s1 + $0x3a8] sm:$0xff]   ;;  %v3906_v60 = vld [vmem:[%s5203_s1 + $0x320] sm:$0xff]  }
  0x23   : > { %3487 = vmatpush3.bf16.msra.mxu1 %v3875_v19  ;;  %3466 = vmatprep.subr.bf16.mxu0 %v3876_v20  ;;  %v3907_v61 = vld [vmem:[%s5203_s1 + $0x3a0] sm:$0xff]   ;;  %v3908_v62 = vld [vmem:[%s5203_s1 + $0x358] sm:$0xff]   ;;  %v3912_v2 = vld [vmem:[%s5203_s1 + $0x350] sm:$0xff]  }
  0x24   : > { %3488 = vmatprep.subr.bf16.mxu1 %v3877_v21  ;;  %v3909_v63 = vld [vmem:[%s5203_s1 + $0x3d8] sm:$0xff]   ;;  %v3913_v3 = vld [vmem:[%s5203_s1 + $0x3d0] sm:$0xff]   ;;  %v3916_v6 = vld [vmem:[%s5203_s1 + $0x348] sm:$0xff]  }
  0x25   : > { %v3910_v0 = vld [vmem:[%s5203_s1 + $0x318] sm:$0xff]   ;;  %v3914_v4 = vld [vmem:[%s5203_s1 + $0x310] sm:$0xff]   ;;  %v3917_v7 = vld [vmem:[%s5203_s1 + $0x3c8] sm:$0xff]  }
  0x26   : > { %3467 = vmatpush3.bf16.msra.mxu0 %v3878_v22  ;;  %v3911_v1 = vld [vmem:[%s5203_s1 + $0x398] sm:$0xff]   ;;  %v3915_v5 = vld [vmem:[%s5203_s1 + $0x390] sm:$0xff]   ;;  %v3918_v8 = vld [vmem:[%s5203_s1 + $0x308] sm:$0xff]  }
  0x27   : > { %3489 = vmatpush3.bf16.msra.mxu1 %v3879_v23  ;;  %3468 = vmatprep.subr.bf16.mxu0 %v3880_v24  ;;  %v3919_v9 = vld [vmem:[%s5203_s1 + $0x388] sm:$0xff]   ;;  %v3920_v10 = vld [vmem:[%s5203_s1 + $0x340] sm:$0xff]   ;;  %v3924_v16 = vld [vmem:[%s5203_s1 + $0x78] sm:$0xff]  }
  0x28   : > { %3490 = vmatprep.subr.bf16.mxu1 %v3881_v25  ;;  %v3921_v11 = vld [vmem:[%s5203_s1 + $0x3c0] sm:$0xff]   ;;  %v3925_v17 = vld [vmem:[%s5203_s1 + $0xf8] sm:$0xff]   ;;  %v3928_v21 = vld [vmem:[%s5203_s1 + $0x70] sm:$0xff]  }
  0x29   : > { %v3922_v12 = vld [vmem:[%s5203_s1 + $0x300] sm:$0xff]   ;;  %v3926_v19 = vld [vmem:[%s5203_s1 + $0x38] sm:$0xff]   ;;  %v3929_v22 = vld [vmem:[%s5203_s1 + $0xf0] sm:$0xff]  }
  0x2a   : > { %3469 = vmatpush3.bf16.msra.mxu0 %v3882_v26  ;;  %v3923_v14 = vld [vmem:[%s5203_s1 + $0x380] sm:$0xff]   ;;  %v3927_v20 = vld [vmem:[%s5203_s1 + $0xb8] sm:$0xff]   ;;  %v3930_v23 = vld [vmem:[%s5203_s1 + $0x30] sm:$0xff]  }
  0x2b   : > { %3491 = vmatpush3.bf16.msra.mxu1 %v3883_v27  ;;  %3470 = vmatprep.subr.bf16.mxu0 %v3884_v28  ;;  %v3931_v24 = vld [vmem:[%s5203_s1 + $0xb0] sm:$0xff]   ;;  %v3932_v25 = vld [vmem:[%s5203_s1 + $0x68] sm:$0xff]  }
  0x2c   : > { %3492 = vmatprep.subr.bf16.mxu1 %v3885_v29  ;;  %v3933_v26 = vld [vmem:[%s5203_s1 + $0xe8] sm:$0xff]   ;;  %v3936_v29 = vld [vmem:[%s5203_s1 + $0x60] sm:$0xff]   ;;  %v3945_v38 = vld [vmem:[%s5203_s1 + $0xd0] sm:$0xff]  }
  0x2d   : > { %v3934_v27 = vld [vmem:[%s5203_s1 + $0x28] sm:$0xff]   ;;  %v3946_v39 = vld [vmem:[%s5203_s1 + $0x10] sm:$0xff]  }
  0x2e   : > { %3471 = vmatpush3.bf16.msra.mxu0 %v3886_v30  ;;  %v3935_v28 = vld [vmem:[%s5203_s1 + $0xa8] sm:$0xff]   ;;  %v3937_v30 = vld [vmem:[%s5203_s1 + $0xe0] sm:$0xff]  }
  0x2f   : > { %3493 = vmatpush3.bf16.msra.mxu1 %v3887_v31  ;;  %3472 = vmatprep.subr.bf16.mxu0 %v3888_v32  ;;  %v3938_v31 = vld [vmem:[%s5203_s1 + $0x20] sm:$0xff]  }
  0x30   : > { %3494 = vmatprep.subr.bf16.mxu1 %v3889_v33  ;;  %v3939_v32 = vld [vmem:[%s5203_s1 + $0xa0] sm:$0xff]   ;;  %v3940_v33 = vld [vmem:[%s5203_s1 + $0x58] sm:$0xff]  }
  0x32   : > { %3473 = vmatpush3.bf16.msra.mxu0 %v3890_v34  ;;  %v3941_v34 = vld [vmem:[%s5203_s1 + $0xd8] sm:$0xff]  }
  0x33   : > { %3495 = vmatpush3.bf16.msra.mxu1 %v3891_v35  ;;  %3502 = vmatprep.subr.bf16.mxu0 %v3892_v36  ;;  %v3942_v35 = vld [vmem:[%s5203_s1 + $0x18] sm:$0xff]  }
  0x34   : > { %3524 = vmatprep.subr.bf16.mxu1 %v3893_v37  ;;  %v3943_v36 = vld [vmem:[%s5203_s1 + $0x98] sm:$0xff]   ;;  %v3944_v37 = vld [vmem:[%s5203_s1 + $0x50] sm:$0xff]  }
  0x93   : > { %v4380_v45 = vpop.permute.xlu0 %341 }
  0x94   : > { %vm344_vm0 = vcmp.eq.s32.totalorder %v4369_v41, %v4380_v45  ;;  %vm346_vm1 = vcmp.eq.s32.totalorder %v4372_v42, %v4380_v45  ;;  %vm343_vm2 = vcmp.eq.s32.totalorder %v4366_v40, %v4380_v45  ;;  %vm345_vm4 = vcmp.eq.s32.totalorder %v4375_v43, %v4380_v45 }
  0x95   : > { %vm3181_vm3 = vmpackc.low %vm344_vm0, %vm344_vm0  ;;  %vm348_vm6 = vcmp.eq.s32.totalorder %v4378_v44, %v4380_v45  ;;  %vm350_vm8 = vcmp.eq.s32.totalorder %v4386_v47, %v4380_v45  ;;  %vm347_vm12 = vcmp.eq.s32.totalorder %v4491_v13, %v4380_v45  ;;  %vm349_vm13 = vcmp.eq.s32.totalorder %v4497_v15, %v4380_v45  ;;  %v3947_v45 = vld [vmem:[%s5203_s1 + $0x90] sm:$0xff]  }
  0x96   : > { %3182 = vmatprep.mubr.msk.bf16.mxu0 %vm3181_vm3, %v4182_v50  ;;  %vm3185_vm5 = vmpackc.low %vm346_vm1, %vm346_vm1 }
  0x97   : > { %3186 = vmatprep.mubr.msk.bf16.mxu1 %vm3185_vm5, %v4182_v50  ;;  %vm3183_vm7 = vmpackc.low %vm343_vm2, %vm343_vm2 }
  0x98   : > { %3184 = vmatmul.mubr.msk.bf16.vlgmr.msra.gmra.mxu0 %vm3183_vm7, %v4182_v50  ;;  %vm3187_vm9 = vmpackc.low %vm345_vm4, %vm345_vm4  ;;  %v4505_v18 = vpop.permute.xlu0 %178 }
  0x99   : > { %3188 = vmatmul.mubr.msk.bf16.vlgmr.msra.gmra.mxu1 %vm3187_vm9, %v4182_v50  ;;  %3503 = vmatpush3.bf16.msra.mxu0 %v3894_v46  ;;  %vm3189_vm10 = vmpackc.low %vm348_vm6, %vm348_vm6  ;;  %vm181_vm14 = vcmp.eq.s32.totalorder %v4369_v41, %v4505_v18  ;;  %vm183_vm0 = vcmp.eq.s32.totalorder %v4372_v42, %v4505_v18  ;;  %v3948_v46 = vld [vmem:[%s5203_s1 + $0x48] sm:$0xff]   ;;  %vm180_vm4 = vcmp.eq.s32.totalorder %v4366_v40, %v4505_v18 }
  0x9a   : > { %3525 = vmatpush3.bf16.msra.mxu1 %v3895_v48  ;;  %3190 = vmatprep.mubr.msk.bf16.mxu0 %vm3189_vm10, %v4182_v50  ;;  %vm3193_vm11 = vmpackc.low %vm350_vm8, %vm350_vm8  ;;  %v3949_v48 = vld [vmem:[%s5203_s1 + $0xc8] sm:$0xff]   ;;  %vm182_vm5 = vcmp.eq.s32.totalorder %v4375_v43, %v4505_v18  ;;  %vm185_vm6 = vcmp.eq.s32.totalorder %v4378_v44, %v4505_v18  ;;  %vm187_vm8 = vcmp.eq.s32.totalorder %v4386_v47, %v4505_v18 }
  0x9b   : > { %3194 = vmatprep.mubr.msk.bf16.mxu1 %vm3193_vm11, %v4182_v50  ;;  %3504 = vmatprep.subr.bf16.mxu0 %v3896_v49  ;;  %vm3191_vm15 = vmpackc.low %vm347_vm12, %vm347_vm12  ;;  %v3950_v49 = vld [vmem:[%s5203_s1 + $0x8] sm:$0xff]   ;;  %vm184_vm12 = vcmp.eq.s32.totalorder %v4491_v13, %v4505_v18 }
  0x9c   : > { %3526 = vmatprep.subr.bf16.mxu1 %v3897_v51  ;;  %vm3195_vm1 = vmpackc.low %vm349_vm13, %vm349_vm13  ;;  %v3951_v51 = vld [vmem:[%s5203_s1 + $0x88] sm:$0xff]   ;;  %vm186_vm13 = vcmp.eq.s32.totalorder %v4497_v15, %v4505_v18  ;;  %v3994_v18 = vld [vmem:[%s5203_s1 + $0x430] sm:$0xff]  }
  0x9d   : > { %3505 = vmatpush3.bf16.msra.mxu0 %v3898_v52  ;;  %vm3261_vm2 = vmpackc.low %vm181_vm14, %vm181_vm14  ;;  %v3952_v52 = vld [vmem:[%s5203_s1 + $0x40] sm:$0xff]  }
  0x9e   : > { %3527 = vmatpush3.bf16.msra.mxu1 %v3899_v53  ;;  %3506 = vmatprep.subr.bf16.mxu0 %v3900_v54  ;;  %vm3265_vm3 = vmpackc.low %vm183_vm0, %vm183_vm0  ;;  %v3953_v53 = vld [vmem:[%s5203_s1 + $0xc0] sm:$0xff]  }
  0x9f   : > { %3528 = vmatprep.subr.bf16.mxu1 %v3901_v55  ;;  %v3954_v54 = vld [vmem:[%s5203_s1] sm:$0xff]   ;;  %vm3263_vm7 = vmpackc.low %vm180_vm4, %vm180_vm4 }
  0xa0   : > { %v3955_v55 = vld [vmem:[%s5203_s1 + $0x80] sm:$0xff]   ;;  %vm3267_vm9 = vmpackc.low %vm182_vm5, %vm182_vm5 }
  0xa1   : > { %3507 = vmatpush3.bf16.msra.mxu0 %v3902_v56  ;;  %v3956_v56 = vld [vmem:[%s5203_s1 + $0x178] sm:$0xff]   ;;  %vm3269_vm10 = vmpackc.low %vm185_vm6, %vm185_vm6 }
  0xa2   : > { %3529 = vmatpush3.bf16.msra.mxu1 %v3903_v57  ;;  %3508 = vmatprep.subr.bf16.mxu0 %v3904_v58  ;;  %v3957_v57 = vld [vmem:[%s5203_s1 + $0x1f8] sm:$0xff]   ;;  %vm3273_vm11 = vmpackc.low %vm187_vm8, %vm187_vm8 }
  0xa3   : > { %3530 = vmatprep.subr.bf16.mxu1 %v3905_v59  ;;  %v3958_v58 = vld [vmem:[%s5203_s1 + $0x138] sm:$0xff]  }
  0xa4   : > { %v3959_v59 = vld [vmem:[%s5203_s1 + $0x1b8] sm:$0xff]  }
  0xa5   : > { %3509 = vmatpush3.bf16.msra.mxu0 %v3906_v60  ;;  %v3960_v60 = vld [vmem:[%s5203_s1 + $0x170] sm:$0xff]  }
  0xa6   : > { %3531 = vmatpush3.bf16.msra.mxu1 %v3907_v61  ;;  %3510 = vmatprep.subr.bf16.mxu0 %v3908_v62  ;;  %v3961_v61 = vld [vmem:[%s5203_s1 + $0x1f0] sm:$0xff]  }
  0xa7   : > { %3532 = vmatprep.subr.bf16.mxu1 %v3909_v63  ;;  %v3962_v62 = vld [vmem:[%s5203_s1 + $0x130] sm:$0xff]  }
  0xa8   : > { %v3963_v63 = vld [vmem:[%s5203_s1 + $0x1b0] sm:$0xff]  }
  0xa9   : > { %3511 = vmatpush3.bf16.msra.mxu0 %v3910_v0  ;;  %v3964_v0 = vld [vmem:[%s5203_s1 + $0x168] sm:$0xff]  }
  0xaa   : > { %3533 = vmatpush3.bf16.msra.mxu1 %v3911_v1  ;;  %3512 = vmatprep.subr.bf16.mxu0 %v3912_v2  ;;  %v3965_v1 = vld [vmem:[%s5203_s1 + $0x1e8] sm:$0xff]  }
  0xab   : > { %3534 = vmatprep.subr.bf16.mxu1 %v3913_v3  ;;  %v3966_v2 = vld [vmem:[%s5203_s1 + $0x128] sm:$0xff]  }
  0xac   : > { %v3967_v3 = vld [vmem:[%s5203_s1 + $0x1a8] sm:$0xff]  }
  0xad   : > { %3513 = vmatpush3.bf16.msra.mxu0 %v3914_v4  ;;  %v3968_v4 = vld [vmem:[%s5203_s1 + $0x160] sm:$0xff]  }
  0xae   : > { %3535 = vmatpush3.bf16.msra.mxu1 %v3915_v5  ;;  %3514 = vmatprep.subr.bf16.mxu0 %v3916_v6  ;;  %v3969_v5 = vld [vmem:[%s5203_s1 + $0x1e0] sm:$0xff]  }
  0xaf   : > { %3536 = vmatprep.subr.bf16.mxu1 %v3917_v7  ;;  %v3970_v6 = vld [vmem:[%s5203_s1 + $0x120] sm:$0xff]  }
  0xb0   : > { %v3971_v7 = vld [vmem:[%s5203_s1 + $0x1a0] sm:$0xff]  }
  0xb1   : > { %3515 = vmatpush3.bf16.msra.mxu0 %v3918_v8  ;;  %v3972_v8 = vld [vmem:[%s5203_s1 + $0x158] sm:$0xff]  }
  0xb2   : > { %3537 = vmatpush3.bf16.msra.mxu1 %v3919_v9  ;;  %3516 = vmatprep.subr.bf16.mxu0 %v3920_v10  ;;  %v3973_v9 = vld [vmem:[%s5203_s1 + $0x1d8] sm:$0xff]  }
  0xb3   : > { %3538 = vmatprep.subr.bf16.mxu1 %v3921_v11  ;;  %v3974_v10 = vld [vmem:[%s5203_s1 + $0x118] sm:$0xff]  }
  0xb4   : > { %v3975_v11 = vld [vmem:[%s5203_s1 + $0x198] sm:$0xff]  }
  0xb5   : > { %3517 = vmatpush3.bf16.msra.mxu0 %v3922_v12  ;;  %v3976_v12 = vld [vmem:[%s5203_s1 + $0x150] sm:$0xff]  }
  0xb6   : > { %3539 = vmatpush3.bf16.msra.mxu1 %v3923_v14  ;;  %3546 = vmatprep.subr.bf16.mxu0 %v3924_v16  ;;  %v3977_v14 = vld [vmem:[%s5203_s1 + $0x1d0] sm:$0xff]  }
  0xb7   : > { %3568 = vmatprep.subr.bf16.mxu1 %v3925_v17  ;;  %v3978_v16 = vld [vmem:[%s5203_s1 + $0x110] sm:$0xff]  }
  0xb8   : > { %3192 = vmatmul.mubr.msk.bf16.vlgmr.msra.gmra.mxu0 %vm3191_vm15, %v4182_v50  ;;  %v3979_v17 = vld [vmem:[%s5203_s1 + $0x190] sm:$0xff]   ;;  %vm3271_vm15 = vmpackc.low %vm184_vm12, %vm184_vm12 }
  0xb9   : > { %3196 = vmatmul.mubr.msk.bf16.vlgmr.msra.gmra.mxu1 %vm3195_vm1, %v4182_v50  ;;  %3547 = vmatpush3.bf16.msra.mxu0 %v3926_v19  ;;  %v3980_v19 = vld [vmem:[%s5203_s1 + $0x148] sm:$0xff]   ;;  %vm3275_vm1 = vmpackc.low %vm186_vm13, %vm186_vm13 }
  0xba   : > { %3569 = vmatpush3.bf16.msra.mxu1 %v3927_v20  ;;  %3548 = vmatprep.subr.bf16.mxu0 %v3928_v21  ;;  %v3981_v20 = vld [vmem:[%s5203_s1 + $0x1c8] sm:$0xff]  }
  0xbb   : > { %3570 = vmatprep.subr.bf16.mxu1 %v3929_v22  ;;  %3262 = vmatprep.mubr.msk.bf16.mxu0 %vm3261_vm2, %v4182_v50  ;;  %v3982_v21 = vld [vmem:[%s5203_s1 + $0x108] sm:$0xff]  }
  0xbc   : > { %3266 = vmatprep.mubr.msk.bf16.mxu1 %vm3265_vm3, %v4182_v50  ;;  %v3983_v22 = vld [vmem:[%s5203_s1 + $0x188] sm:$0xff]  }
  0xbd   : > { %3549 = vmatpush3.bf16.msra.mxu0 %v3930_v23  ;;  %v3984_v23 = vld [vmem:[%s5203_s1 + $0x140] sm:$0xff]  }
  0xbe   : > { %3571 = vmatpush3.bf16.msra.mxu1 %v3931_v24  ;;  %3550 = vmatprep.subr.bf16.mxu0 %v3932_v25  ;;  %v3985_v24 = vld [vmem:[%s5203_s1 + $0x1c0] sm:$0xff]  }
  0xbf   : > { %3572 = vmatprep.subr.bf16.mxu1 %v3933_v26  ;;  %v3986_v25 = vld [vmem:[%s5203_s1 + $0x100] sm:$0xff]  }
  0xc0   : > { %v3987_v26 = vld [vmem:[%s5203_s1 + $0x180] sm:$0xff]  }
  0xc1   : > { %3551 = vmatpush3.bf16.msra.mxu0 %v3934_v27  ;;  %v3988_v27 = vld [vmem:[%s5203_s1 + $0x478] sm:$0xff]  }
  0xc2   : > { %3573 = vmatpush3.bf16.msra.mxu1 %v3935_v28  ;;  %3552 = vmatprep.subr.bf16.mxu0 %v3936_v29  ;;  %v3989_v28 = vld [vmem:[%s5203_s1 + $0x4f8] sm:$0xff]   ;;  %v4723_v29 = vpop.permute.xlu1 %1592 }
  0xc3   : > { %3574 = vmatprep.subr.bf16.mxu1 %v3937_v30  ;;  %v3990_v30 = vld [vmem:[%s5203_s1 + $0x438] sm:$0xff]   ;;  %vm1595_vm14 = vcmp.eq.s32.totalorder %v4369_v41, %v4723_v29  ;;  %vm1597_vm0 = vcmp.eq.s32.totalorder %v4372_v42, %v4723_v29  ;;  %vm1594_vm4 = vcmp.eq.s32.totalorder %v4366_v40, %v4723_v29  ;;  %vm1596_vm5 = vcmp.eq.s32.totalorder %v4375_v43, %v4723_v29 }
  0xc4   : > { %vm3349_vm2 = vmpackc.low %vm1595_vm14, %vm1595_vm14  ;;  %vm1598_vm12 = vcmp.eq.s32.totalorder %v4491_v13, %v4723_v29  ;;  %vm1600_vm13 = vcmp.eq.s32.totalorder %v4497_v15, %v4723_v29 }
  0xc5   : > { %3553 = vmatpush3.bf16.msra.mxu0 %v3938_v31  ;;  %v3991_v31 = vld [vmem:[%s5203_s1 + $0x4b8] sm:$0xff]   ;;  %vm3353_vm3 = vmpackc.low %vm1597_vm0, %vm1597_vm0 }
  0xc6   : > { %3575 = vmatpush3.bf16.msra.mxu1 %v3939_v32  ;;  %3554 = vmatprep.subr.bf16.mxu0 %v3940_v33  ;;  %v3992_v32 = vld [vmem:[%s5203_s1 + $0x470] sm:$0xff]   ;;  %vm4831_vm6 = vmpackc.low %vm1594_vm4, %vm1594_vm4 }
  0xc7   : > { %3576 = vmatprep.subr.bf16.mxu1 %v3941_v34  ;;  %v3993_v33 = vld [vmem:[%s5203_s1 + $0x4f0] sm:$0xff]   ;;  %vm3355_vm8 = vmpackc.low %vm1596_vm5, %vm1596_vm5 }
  0xc8   : > { %v3995_v34 = vld [vmem:[%s5203_s1 + $0x4b0] sm:$0xff]  }
  0xc9   : > { %3555 = vmatpush3.bf16.msra.mxu0 %v3942_v35  ;;  %v3996_v35 = vld [vmem:[%s5203_s1 + $0x468] sm:$0xff]  }
  0xca   : > { %3577 = vmatpush3.bf16.msra.mxu1 %v3943_v36  ;;  %3556 = vmatprep.subr.bf16.mxu0 %v3944_v37  ;;  %v3997_v36 = vld [vmem:[%s5203_s1 + $0x4e8] sm:$0xff]  }
  0xcb   : > { %3578 = vmatprep.subr.bf16.mxu1 %v3945_v38  ;;  %v3998_v37 = vld [vmem:[%s5203_s1 + $0x428] sm:$0xff]  }
  0xcc   : > { %v3999_v38 = vld [vmem:[%s5203_s1 + $0x4a8] sm:$0xff]  }
  0xcd   : > { %3557 = vmatpush3.bf16.msra.mxu0 %v3946_v39  ;;  %v4000_v39 = vld [vmem:[%s5203_s1 + $0x460] sm:$0xff]  }
  0xce   : > { %3579 = vmatpush3.bf16.msra.mxu1 %v3947_v45  ;;  %3558 = vmatprep.subr.bf16.mxu0 %v3948_v46  ;;  %v4001_v45 = vld [vmem:[%s5203_s1 + $0x4e0] sm:$0xff]  }
  0xcf   : > { %3580 = vmatprep.subr.bf16.mxu1 %v3949_v48  ;;  %v4002_v46 = vld [vmem:[%s5203_s1 + $0x420] sm:$0xff]  }
  0xd0   : > { %v4003_v48 = vld [vmem:[%s5203_s1 + $0x4a0] sm:$0xff]  }
  0xd1   : > { %3559 = vmatpush3.bf16.msra.mxu0 %v3950_v49  ;;  %v4004_v49 = vld [vmem:[%s5203_s1 + $0x458] sm:$0xff]  }
  0xd2   : > { %3581 = vmatpush3.bf16.msra.mxu1 %v3951_v51  ;;  %3560 = vmatprep.subr.bf16.mxu0 %v3952_v52  ;;  %v4005_v51 = vld [vmem:[%s5203_s1 + $0x4d8] sm:$0xff]  }
  0xd3   : > { %3582 = vmatprep.subr.bf16.mxu1 %v3953_v53  ;;  %v4006_v52 = vld [vmem:[%s5203_s1 + $0x418] sm:$0xff]  }
  0xd4   : > { %v4007_v53 = vld [vmem:[%s5203_s1 + $0x498] sm:$0xff]  }
  0xd5   : > { %3561 = vmatpush3.bf16.msra.mxu0 %v3954_v54  ;;  %v4008_v54 = vld [vmem:[%s5203_s1 + $0x450] sm:$0xff]  }
  0xd6   : > { %3583 = vmatpush3.bf16.msra.mxu1 %v3955_v55  ;;  %3590 = vmatprep.subr.bf16.mxu0 %v3956_v56  ;;  %v4009_v55 = vld [vmem:[%s5203_s1 + $0x4d0] sm:$0xff]  }
  0xd7   : > { %3612 = vmatprep.subr.bf16.mxu1 %v3957_v57  ;;  %v4010_v56 = vld [vmem:[%s5203_s1 + $0x410] sm:$0xff]  }
  0xd8   : > { %3264 = vmatmul.mubr.msk.bf16.vlgmr.msra.gmra.mxu0 %vm3263_vm7, %v4182_v50  ;;  %v4011_v57 = vld [vmem:[%s5203_s1 + $0x490] sm:$0xff]   ;;  %vm1599_vm7 = vcmp.eq.s32.totalorder %v4378_v44, %v4723_v29 }
  0xd9   : > { %3268 = vmatmul.mubr.msk.bf16.vlgmr.msra.gmra.mxu1 %vm3267_vm9, %v4182_v50  ;;  %3591 = vmatpush3.bf16.msra.mxu0 %v3958_v58  ;;  %v4012_v58 = vld [vmem:[%s5203_s1 + $0x448] sm:$0xff]   ;;  %vm1601_vm9 = vcmp.eq.s32.totalorder %v4386_v47, %v4723_v29  ;;  %v4058_v29 = vld [vmem:[%s5203_s1 + $0x630] sm:$0xff]  }
  0xda   : > { %3270 = vmatprep.mubr.msk.bf16.mxu0 %vm3269_vm10, %v4182_v50  ;;  %3613 = vmatpush3.bf16.msra.mxu1 %v3959_v59  ;;  %v4013_v59 = vld [vmem:[%s5203_s1 + $0x4c8] sm:$0xff]   ;;  %vm3357_vm10 = vmpackc.low %vm1599_vm7, %vm1599_vm7 }
  0xdb   : > { %3274 = vmatprep.mubr.msk.bf16.mxu1 %vm3273_vm11, %v4182_v50  ;;  %3592 = vmatprep.subr.bf16.mxu0 %v3960_v60  ;;  %v4014_v60 = vld [vmem:[%s5203_s1 + $0x408] sm:$0xff]   ;;  %vm3361_vm11 = vmpackc.low %vm1601_vm9, %vm1601_vm9 }
  0xdc   : > { %3614 = vmatprep.subr.bf16.mxu1 %v3961_v61  ;;  %v4015_v61 = vld [vmem:[%s5203_s1 + $0x488] sm:$0xff]  }
  0xdd   : > { %3593 = vmatpush3.bf16.msra.mxu0 %v3962_v62  ;;  %v4016_v62 = vld [vmem:[%s5203_s1 + $0x440] sm:$0xff]  }
  0xde   : > { %3615 = vmatpush3.bf16.msra.mxu1 %v3963_v63  ;;  %3594 = vmatprep.subr.bf16.mxu0 %v3964_v0  ;;  %v4017_v63 = vld [vmem:[%s5203_s1 + $0x4c0] sm:$0xff]  }
  0xdf   : > { %3616 = vmatprep.subr.bf16.mxu1 %v3965_v1  ;;  %v4018_v0 = vld [vmem:[%s5203_s1 + $0x400] sm:$0xff]  }
  0xe0   : > { %v4019_v1 = vld [vmem:[%s5203_s1 + $0x480] sm:$0xff]  }
  0xe1   : > { %3595 = vmatpush3.bf16.msra.mxu0 %v3966_v2  ;;  %v4075_v2 = vld [vmem:[%s5203_s1 + $0x690] sm:$0xff]  }
  0xe2   : > { %3617 = vmatpush3.bf16.msra.mxu1 %v3967_v3  ;;  %3596 = vmatprep.subr.bf16.mxu0 %v3968_v4  ;;  %v4020_v3 = vld [vmem:[%s5203_s1 + $0x578] sm:$0xff]  }
  0xe3   : > { %3618 = vmatprep.subr.bf16.mxu1 %v3969_v5  ;;  %v4021_v4 = vld [vmem:[%s5203_s1 + $0x5f8] sm:$0xff]  }
  0xe4   : > { %v4022_v5 = vld [vmem:[%s5203_s1 + $0x538] sm:$0xff]  }
  0xe5   : > { %3597 = vmatpush3.bf16.msra.mxu0 %v3970_v6  ;;  %v4023_v6 = vld [vmem:[%s5203_s1 + $0x5b8] sm:$0xff]  }
  0xe6   : > { %3619 = vmatpush3.bf16.msra.mxu1 %v3971_v7  ;;  %3598 = vmatprep.subr.bf16.mxu0 %v3972_v8  ;;  %v4024_v7 = vld [vmem:[%s5203_s1 + $0x570] sm:$0xff]  }
  0xe7   : > { %3620 = vmatprep.subr.bf16.mxu1 %v3973_v9  ;;  %v4025_v8 = vld [vmem:[%s5203_s1 + $0x5f0] sm:$0xff]  }
  0xe8   : > { %v4026_v9 = vld [vmem:[%s5203_s1 + $0x530] sm:$0xff]  }
  0xe9   : > { %3599 = vmatpush3.bf16.msra.mxu0 %v3974_v10  ;;  %v4027_v10 = vld [vmem:[%s5203_s1 + $0x5b0] sm:$0xff]  }
  0xea   : > { %3621 = vmatpush3.bf16.msra.mxu1 %v3975_v11  ;;  %3600 = vmatprep.subr.bf16.mxu0 %v3976_v12  ;;  %v4028_v11 = vld [vmem:[%s5203_s1 + $0x568] sm:$0xff]  }
  0xeb   : > { %3622 = vmatprep.subr.bf16.mxu1 %v3977_v14  ;;  %v4029_v12 = vld [vmem:[%s5203_s1 + $0x5e8] sm:$0xff]  }
  0xec   : > { %v4030_v14 = vld [vmem:[%s5203_s1 + $0x528] sm:$0xff]  }
  0xed   : > { %3601 = vmatpush3.bf16.msra.mxu0 %v3978_v16  ;;  %v4031_v16 = vld [vmem:[%s5203_s1 + $0x5a8] sm:$0xff]  }
  0xee   : > { %3623 = vmatpush3.bf16.msra.mxu1 %v3979_v17  ;;  %3602 = vmatprep.subr.bf16.mxu0 %v3980_v19  ;;  %v4032_v17 = vld [vmem:[%s5203_s1 + $0x560] sm:$0xff]  }
  0xef   : > { %3624 = vmatprep.subr.bf16.mxu1 %v3981_v20  ;;  %v4033_v19 = vld [vmem:[%s5203_s1 + $0x5e0] sm:$0xff]  }
  0xf0   : > { %v4034_v20 = vld [vmem:[%s5203_s1 + $0x520] sm:$0xff]  }
  0xf1   : > { %3603 = vmatpush3.bf16.msra.mxu0 %v3982_v21  ;;  %v4035_v21 = vld [vmem:[%s5203_s1 + $0x5a0] sm:$0xff]  }
  0xf2   : > { %3625 = vmatpush3.bf16.msra.mxu1 %v3983_v22  ;;  %3604 = vmatprep.subr.bf16.mxu0 %v3984_v23  ;;  %v4036_v22 = vld [vmem:[%s5203_s1 + $0x558] sm:$0xff]  }
  0xf3   : > { %3626 = vmatprep.subr.bf16.mxu1 %v3985_v24  ;;  %v4037_v23 = vld [vmem:[%s5203_s1 + $0x5d8] sm:$0xff]  }
  0xf4   : > { %v4038_v24 = vld [vmem:[%s5203_s1 + $0x518] sm:$0xff]  }
  0xf5   : > { %3605 = vmatpush3.bf16.msra.mxu0 %v3986_v25  ;;  %v4039_v25 = vld [vmem:[%s5203_s1 + $0x598] sm:$0xff]  }
  0xf6   : > { %3627 = vmatpush3.bf16.msra.mxu1 %v3987_v26  ;;  %3634 = vmatprep.subr.bf16.mxu0 %v3988_v27  ;;  %v4040_v26 = vld [vmem:[%s5203_s1 + $0x550] sm:$0xff]  }
  0xf7   : > { %3656 = vmatprep.subr.bf16.mxu1 %v3989_v28  ;;  %v4041_v27 = vld [vmem:[%s5203_s1 + $0x5d0] sm:$0xff]  }
  0xf8   : > { %3272 = vmatmul.mubr.msk.bf16.vlgmr.msra.gmra.mxu0 %vm3271_vm15, %v4182_v50  ;;  %v4042_v28 = vld [vmem:[%s5203_s1 + $0x510] sm:$0xff]   ;;  %vm3359_vm15 = vmpackc.low %vm1598_vm12, %vm1598_vm12 }
  0xf9   : > { %3276 = vmatmul.mubr.msk.bf16.vlgmr.msra.gmra.mxu1 %vm3275_vm1, %v4182_v50  ;;  %3635 = vmatpush3.bf16.msra.mxu0 %v3990_v30  ;;  %v4043_v30 = vld [vmem:[%s5203_s1 + $0x590] sm:$0xff]   ;;  %vm3363_vm1 = vmpackc.low %vm1600_vm13, %vm1600_vm13 }
  0xfa   : > { %3657 = vmatpush3.bf16.msra.mxu1 %v3991_v31  ;;  %3636 = vmatprep.subr.bf16.mxu0 %v3992_v32  ;;  %v4044_v31 = vld [vmem:[%s5203_s1 + $0x548] sm:$0xff]  }
  0xfb   : > { %3658 = vmatprep.subr.bf16.mxu1 %v3993_v33  ;;  %3350 = vmatprep.mubr.msk.bf16.mxu0 %vm3349_vm2, %v4182_v50  ;;  %v4045_v32 = vld [vmem:[%s5203_s1 + $0x5c8] sm:$0xff]  }
  0xfc   : > { %3354 = vmatprep.mubr.msk.bf16.mxu1 %vm3353_vm3, %v4182_v50  ;;  %v4046_v33 = vld [vmem:[%s5203_s1 + $0x508] sm:$0xff]  }
  0xfd   : > { %3637 = vmatpush3.bf16.msra.mxu0 %v3994_v18  ;;  %v4047_v18 = vld [vmem:[%s5203_s1 + $0x588] sm:$0xff]  }
  0xfe   : > { %3659 = vmatpush3.bf16.msra.mxu1 %v3995_v34  ;;  %3638 = vmatprep.subr.bf16.mxu0 %v3996_v35  ;;  %v4048_v34 = vld [vmem:[%s5203_s1 + $0x540] sm:$0xff]  }
  0xff   : > { %3660 = vmatprep.subr.bf16.mxu1 %v3997_v36  ;;  %v4049_v35 = vld [vmem:[%s5203_s1 + $0x5c0] sm:$0xff]  }
 0x100   : > { %v4050_v36 = vld [vmem:[%s5203_s1 + $0x500] sm:$0xff]  }
 0x101   : > { %3639 = vmatpush3.bf16.msra.mxu0 %v3998_v37  ;;  %v4051_v37 = vld [vmem:[%s5203_s1 + $0x580] sm:$0xff]  }
 0x102   : > { %3661 = vmatpush3.bf16.msra.mxu1 %v3999_v38  ;;  %3640 = vmatprep.subr.bf16.mxu0 %v4000_v39  ;;  %v4052_v38 = vld [vmem:[%s5203_s1 + $0x678] sm:$0xff]   ;;  %v4944_v39 = vpop.permute.xlu1 %2300 }
 0x103   : > { %3662 = vmatprep.subr.bf16.mxu1 %v4001_v45  ;;  %v4053_v45 = vld [vmem:[%s5203_s1 + $0x6f8] sm:$0xff]   ;;  %vm2303_vm14 = vcmp.eq.s32.totalorder %v4369_v41, %v4944_v39  ;;  %vm2305_vm0 = vcmp.eq.s32.totalorder %v4372_v42, %v4944_v39  ;;  %v4057_v41 = vld [vmem:[%s5203_s1 + $0x6f0] sm:$0xff]   ;;  %vm2302_vm4 = vcmp.eq.s32.totalorder %v4366_v40, %v4944_v39  ;;  %vm2304_vm5 = vcmp.eq.s32.totalorder %v4375_v43, %v4944_v39 }
 0x104   : > { %vm3437_vm2 = vmpackc.low %vm2303_vm14, %vm2303_vm14  ;;  %v4059_v42 = vld [vmem:[%s5203_s1 + $0x6b0] sm:$0xff]   ;;  %v4086_v40 = vld [vmem:[%s5203_s1 + $0x738] sm:$0xff]   ;;  %vm2306_vm12 = vcmp.eq.s32.totalorder %v4491_v13, %v4944_v39  ;;  %vm2308_vm13 = vcmp.eq.s32.totalorder %v4497_v15, %v4944_v39 }
 0x105   : > { %3641 = vmatpush3.bf16.msra.mxu0 %v4002_v46  ;;  %v4054_v46 = vld [vmem:[%s5203_s1 + $0x638] sm:$0xff]   ;;  %vm3441_vm3 = vmpackc.low %vm2305_vm0, %vm2305_vm0  ;;  %vm3020_vm0 = vcmask 261120  }
 0x106   : > { %3663 = vmatpush3.bf16.msra.mxu1 %v4003_v48  ;;  %3642 = vmatprep.subr.bf16.mxu0 %v4004_v49  ;;  %v4055_v48 = vld [vmem:[%s5203_s1 + $0x6b8] sm:$0xff]   ;;  %v4056_v49 = vld [vmem:[%s5203_s1 + $0x670] sm:$0xff]   ;;  %vm3439_vm7 = vmpackc.low %vm2302_vm4, %vm2302_vm4 }
 0x107   : > { %3664 = vmatprep.subr.bf16.mxu1 %v4005_v51  ;;  %v4060_v51 = vld [vmem:[%s5203_s1 + $0x668] sm:$0xff]   ;;  %vm3443_vm9 = vmpackc.low %vm2304_vm5, %vm2304_vm5  ;;  %v4087_v43 = vld [vmem:[%s5203_s1 + $0x7b8] sm:$0xff]  }
 0x108   : > { %vm3447_vm14 = vmpackc.low %vm2306_vm12, %vm2306_vm12 }
 0x109   : > { %3643 = vmatpush3.bf16.msra.mxu0 %v4006_v52  ;;  %v4061_v52 = vld [vmem:[%s5203_s1 + $0x6e8] sm:$0xff]  }
 0x10a   : > { %3665 = vmatpush3.bf16.msra.mxu1 %v4007_v53  ;;  %3644 = vmatprep.subr.bf16.mxu0 %v4008_v54  ;;  %v4062_v53 = vld [vmem:[%s5203_s1 + $0x628] sm:$0xff]  }
 0x10b   : > { %3666 = vmatprep.subr.bf16.mxu1 %v4009_v55  ;;  %v4063_v54 = vld [vmem:[%s5203_s1 + $0x6a8] sm:$0xff]   ;;  %v4064_v55 = vld [vmem:[%s5203_s1 + $0x660] sm:$0xff]  }
 0x10d   : > { %3645 = vmatpush3.bf16.msra.mxu0 %v4010_v56  ;;  %v4065_v56 = vld [vmem:[%s5203_s1 + $0x6e0] sm:$0xff]  }
 0x10e   : > { %3667 = vmatpush3.bf16.msra.mxu1 %v4011_v57  ;;  %3646 = vmatprep.subr.bf16.mxu0 %v4012_v58  ;;  %v4066_v57 = vld [vmem:[%s5203_s1 + $0x620] sm:$0xff]  }
 0x10f   : > { %3668 = vmatprep.subr.bf16.mxu1 %v4013_v59  ;;  %v4067_v58 = vld [vmem:[%s5203_s1 + $0x6a0] sm:$0xff]   ;;  %v4068_v59 = vld [vmem:[%s5203_s1 + $0x658] sm:$0xff]  }
 0x111   : > { %3647 = vmatpush3.bf16.msra.mxu0 %v4014_v60  ;;  %v4069_v60 = vld [vmem:[%s5203_s1 + $0x6d8] sm:$0xff]  }
 0x112   : > { %3669 = vmatpush3.bf16.msra.mxu1 %v4015_v61  ;;  %3648 = vmatprep.subr.bf16.mxu0 %v4016_v62  ;;  %v4070_v61 = vld [vmem:[%s5203_s1 + $0x618] sm:$0xff]  }
 0x113   : > { %3670 = vmatprep.subr.bf16.mxu1 %v4017_v63  ;;  %v4071_v62 = vld [vmem:[%s5203_s1 + $0x698] sm:$0xff]   ;;  %v4072_v63 = vld [vmem:[%s5203_s1 + $0x650] sm:$0xff]  }
 0x115   : > { %3649 = vmatpush3.bf16.msra.mxu0 %v4018_v0  ;;  %v4073_v0 = vld [vmem:[%s5203_s1 + $0x6d0] sm:$0xff]  }
 0x116   : > { %3671 = vmatpush3.bf16.msra.mxu1 %v4019_v1  ;;  %3678 = vmatprep.subr.bf16.mxu0 %v4020_v3  ;;  %v4074_v1 = vld [vmem:[%s5203_s1 + $0x610] sm:$0xff]   ;;  %v4076_v3 = vld [vmem:[%s5203_s1 + $0x648] sm:$0xff]  }
 0x117   : > { %3700 = vmatprep.subr.bf16.mxu1 %v4021_v4  ;;  %v4077_v4 = vld [vmem:[%s5203_s1 + $0x6c8] sm:$0xff]  }
 0x118   : > { %3352 = vmatmul.mubr.msk.bf16.vlgmr.msra.gmra.mxu0 %vm4831_vm6, %v4182_v50  ;;  %vm2307_vm6 = vcmp.eq.s32.totalorder %v4378_v44, %v4944_v39  ;;  %v4088_v44 = vld [vmem:[%s5203_s1 + $0x770] sm:$0xff]  }
 0x119   : > { %3356 = vmatmul.mubr.msk.bf16.vlgmr.msra.gmra.mxu1 %vm3355_vm8, %v4182_v50  ;;  %3679 = vmatpush3.bf16.msra.mxu0 %v4022_v5  ;;  %v4078_v5 = vld [vmem:[%s5203_s1 + $0x608] sm:$0xff]   ;;  %vm2309_vm8 = vcmp.eq.s32.totalorder %v4386_v47, %v4944_v39  ;;  %v4089_v47 = vld [vmem:[%s5203_s1 + $0x7f0] sm:$0xff]  }
 0x11a   : > { %3358 = vmatprep.mubr.msk.bf16.mxu0 %vm3357_vm10, %v4182_v50  ;;  %3701 = vmatpush3.bf16.msra.mxu1 %v4023_v6  ;;  %v4079_v6 = vld [vmem:[%s5203_s1 + $0x688] sm:$0xff]   ;;  %vm3445_vm10 = vmpackc.low %vm2307_vm6, %vm2307_vm6 }
 0x11b   : > { %3362 = vmatprep.mubr.msk.bf16.mxu1 %vm3361_vm11, %v4182_v50  ;;  %3680 = vmatprep.subr.bf16.mxu0 %v4024_v7  ;;  %v4080_v7 = vld [vmem:[%s5203_s1 + $0x640] sm:$0xff]   ;;  %vm3449_vm11 = vmpackc.low %vm2309_vm8, %vm2309_vm8 }
 0x11c   : > { %3702 = vmatprep.subr.bf16.mxu1 %v4025_v8  ;;  %v4081_v8 = vld [vmem:[%s5203_s1 + $0x6c0] sm:$0xff]  }
 0x11d   : > { %3681 = vmatpush3.bf16.msra.mxu0 %v4026_v9  ;;  %v4082_v9 = vld [vmem:[%s5203_s1 + $0x600] sm:$0xff]  }
 0x11e   : > { %3703 = vmatpush3.bf16.msra.mxu1 %v4027_v10  ;;  %3682 = vmatprep.subr.bf16.mxu0 %v4028_v11  ;;  %v4083_v10 = vld [vmem:[%s5203_s1 + $0x680] sm:$0xff]   ;;  %v4084_v11 = vld [vmem:[%s5203_s1 + $0x778] sm:$0xff]  }
 0x11f   : > { %3704 = vmatprep.subr.bf16.mxu1 %v4029_v12  ;;  %v4085_v12 = vld [vmem:[%s5203_s1 + $0x7f8] sm:$0xff]  }
 0x121   : > { %3683 = vmatpush3.bf16.msra.mxu0 %v4030_v14 }
 0x122   : > { %3705 = vmatpush3.bf16.msra.mxu1 %v4031_v16  ;;  %3684 = vmatprep.subr.bf16.mxu0 %v4032_v17  ;;  %v4090_v17 = vld [vmem:[%s5203_s1 + $0x730] sm:$0xff]  }
 0x123   : > { %3706 = vmatprep.subr.bf16.mxu1 %v4033_v19 }
 0x125   : > { %3685 = vmatpush3.bf16.msra.mxu0 %v4034_v20  ;;  %v4091_v20 = vld [vmem:[%s5203_s1 + $0x7b0] sm:$0xff]  }
 0x126   : > { %3707 = vmatpush3.bf16.msra.mxu1 %v4035_v21  ;;  %3686 = vmatprep.subr.bf16.mxu0 %v4036_v22  ;;  %v4092_v21 = vld [vmem:[%s5203_s1 + $0x768] sm:$0xff]  }
 0x127   : > { %3708 = vmatprep.subr.bf16.mxu1 %v4037_v23 }
 0x129   : > { %3687 = vmatpush3.bf16.msra.mxu0 %v4038_v24  ;;  %v4093_v24 = vld [vmem:[%s5203_s1 + $0x7e8] sm:$0xff]  }
 0x12a   : > { %3709 = vmatpush3.bf16.msra.mxu1 %v4039_v25  ;;  %3688 = vmatprep.subr.bf16.mxu0 %v4040_v26 }
 0x12b   : > { %3710 = vmatprep.subr.bf16.mxu1 %v4041_v27 }
 0x12d   : > { %3689 = vmatpush3.bf16.msra.mxu0 %v4042_v28  ;;  %v4094_v28 = vld [vmem:[%s5203_s1 + $0x728] sm:$0xff]  }
 0x12e   : > { %3711 = vmatpush3.bf16.msra.mxu1 %v4043_v30  ;;  %3690 = vmatprep.subr.bf16.mxu0 %v4044_v31 }
 0x12f   : > { %3712 = vmatprep.subr.bf16.mxu1 %v4045_v32  ;;  %v4095_v32 = vld [vmem:[%s5203_s1 + $0x7a8] sm:$0xff]  }
 0x131   : > { %3691 = vmatpush3.bf16.msra.mxu0 %v4046_v33  ;;  %v4096_v33 = vld [vmem:[%s5203_s1 + $0x760] sm:$0xff]  }
 0x132   : > { %3713 = vmatpush3.bf16.msra.mxu1 %v4047_v18  ;;  %3692 = vmatprep.subr.bf16.mxu0 %v4048_v34  ;;  %v4097_v34 = vld [vmem:[%s5203_s1 + $0x7e0] sm:$0xff]  }
 0x133   : > { %3714 = vmatprep.subr.bf16.mxu1 %v4049_v35  ;;  %v4098_v35 = vld [vmem:[%s5203_s1 + $0x720] sm:$0xff]  }
 0x135   : > { %3693 = vmatpush3.bf16.msra.mxu0 %v4050_v36  ;;  %v4099_v36 = vld [vmem:[%s5203_s1 + $0x7a0] sm:$0xff]  }
 0x136   : > { %3715 = vmatpush3.bf16.msra.mxu1 %v4051_v37  ;;  %3722 = vmatprep.subr.bf16.mxu0 %v4052_v38  ;;  %v4100_v37 = vld [vmem:[%s5203_s1 + $0x758] sm:$0xff]  }
 0x137   : > { %3744 = vmatprep.subr.bf16.mxu1 %v4053_v45  ;;  %v4101_v38 = vld [vmem:[%s5203_s1 + $0x7d8] sm:$0xff]  }
 0x138   : > { %3360 = vmatmul.mubr.msk.bf16.vlgmr.msra.gmra.mxu0 %vm3359_vm15, %v4182_v50  ;;  %v4102_v45 = vld [vmem:[%s5203_s1 + $0x718] sm:$0xff]   ;;  %vm3451_vm15 = vmpackc.low %vm2308_vm13, %vm2308_vm13 }
 0x139   : > { %3364 = vmatmul.mubr.msk.bf16.vlgmr.msra.gmra.mxu1 %vm3363_vm1, %v4182_v50  ;;  %3723 = vmatpush3.bf16.msra.mxu0 %v4054_v46  ;;  %v4103_v46 = vld [vmem:[%s5203_s1 + $0x798] sm:$0xff]  }
 0x13a   : > { %3745 = vmatpush3.bf16.msra.mxu1 %v4055_v48  ;;  %3724 = vmatprep.subr.bf16.mxu0 %v4056_v49  ;;  %v4104_v48 = vld [vmem:[%s5203_s1 + $0x750] sm:$0xff]  }
 0x13b   : > { %3746 = vmatprep.subr.bf16.mxu1 %v4057_v41  ;;  %3438 = vmatprep.mubr.msk.bf16.mxu0 %vm3437_vm2, %v4182_v50  ;;  %v4105_v49 = vld [vmem:[%s5203_s1 + $0x7d0] sm:$0xff]  }
 0x13c   : > { %3442 = vmatprep.mubr.msk.bf16.mxu1 %vm3441_vm3, %v4182_v50  ;;  %v4106_v41 = vld [vmem:[%s5203_s1 + $0x710] sm:$0xff]  }
 0x13d   : > { %3725 = vmatpush3.bf16.msra.mxu0 %v4058_v29  ;;  %v4107_v29 = vld [vmem:[%s5203_s1 + $0x790] sm:$0xff]  }
 0x13e   : > { %3747 = vmatpush3.bf16.msra.mxu1 %v4059_v42  ;;  %3726 = vmatprep.subr.bf16.mxu0 %v4060_v51  ;;  %v4108_v42 = vld [vmem:[%s5203_s1 + $0x748] sm:$0xff]  }
 0x13f   : > { %3748 = vmatprep.subr.bf16.mxu1 %v4061_v52  ;;  %v4109_v51 = vld [vmem:[%s5203_s1 + $0x7c8] sm:$0xff]  }
 0x140   : > { %v4110_v52 = vld [vmem:[%s5203_s1 + $0x708] sm:$0xff]  }
 0x141   : > { %3727 = vmatpush3.bf16.msra.mxu0 %v4062_v53  ;;  %v4111_v53 = vld [vmem:[%s5203_s1 + $0x788] sm:$0xff]  }
 0x142   : > { %3749 = vmatpush3.bf16.msra.mxu1 %v4063_v54  ;;  %3728 = vmatprep.subr.bf16.mxu0 %v4064_v55  ;;  %v4112_v54 = vld [vmem:[%s5203_s1 + $0x740] sm:$0xff]  }
 0x143   : > { %3750 = vmatprep.subr.bf16.mxu1 %v4065_v56  ;;  %v4113_v55 = vld [vmem:[%s5203_s1 + $0x7c0] sm:$0xff]  }
 0x144   : > { %v4114_v56 = vld [vmem:[%s5203_s1 + $0x700] sm:$0xff]  }
 0x145   : > { %3729 = vmatpush3.bf16.msra.mxu0 %v4066_v57  ;;  %v4115_v57 = vld [vmem:[%s5203_s1 + $0x780] sm:$0xff]  }
 0x146   : > { %3751 = vmatpush3.bf16.msra.mxu1 %v4067_v58  ;;  %3730 = vmatprep.subr.bf16.mxu0 %v4068_v59 }
 0x147   : > { %3752 = vmatprep.subr.bf16.mxu1 %v4069_v60 }
 0x149   : > { %3731 = vmatpush3.bf16.msra.mxu0 %v4070_v61 }
 0x14a   : > { %3753 = vmatpush3.bf16.msra.mxu1 %v4071_v62  ;;  %3732 = vmatprep.subr.bf16.mxu0 %v4072_v63 }
 0x14b   : > { %3754 = vmatprep.subr.bf16.mxu1 %v4073_v0 }
 0x14d   : > { %3733 = vmatpush3.bf16.msra.mxu0 %v4074_v1 }
 0x14e   : > { %3755 = vmatpush3.bf16.msra.mxu1 %v4075_v2  ;;  %3734 = vmatprep.subr.bf16.mxu0 %v4076_v3 }
 0x14f   : > { %3756 = vmatprep.subr.bf16.mxu1 %v4077_v4 }
 0x151   : > { %3735 = vmatpush3.bf16.msra.mxu0 %v4078_v5 }
 0x152   : > { %3757 = vmatpush3.bf16.msra.mxu1 %v4079_v6  ;;  %3736 = vmatprep.subr.bf16.mxu0 %v4080_v7 }
 0x153   : > { %3758 = vmatprep.subr.bf16.mxu1 %v4081_v8 }
 0x155   : > { %3737 = vmatpush3.bf16.msra.mxu0 %v4082_v9 }
 0x156   : > { %3759 = vmatpush3.bf16.msra.mxu1 %v4083_v10  ;;  %3766 = vmatprep.subr.bf16.mxu0 %v4084_v11 }
 0x157   : > { %3788 = vmatprep.subr.bf16.mxu1 %v4085_v12 }
 0x158   : > { %3440 = vmatmul.mubr.msk.bf16.vlgmr.msra.gmra.mxu0 %vm3439_vm7, %v4182_v50  ;;  %v3474_v14 = vpop.f32.mrf.mxu0 }
 0x159   : > { %3444 = vmatmul.mubr.msk.bf16.vlgmr.msra.gmra.mxu1 %vm3443_vm9, %v4182_v50  ;;  %v3496_v16 = vpop.f32.mrf.mxu1  ;;  %3767 = vmatpush3.bf16.msra.mxu0 %v4086_v40 }
 0x15a   : > { %3446 = vmatprep.mubr.msk.bf16.mxu0 %vm3445_vm10, %v4182_v50  ;;  %3789 = vmatpush3.bf16.msra.mxu1 %v4087_v43  ;;  %v3475_v19 = vpop.f32.mrf.mxu0 }
 0x15b   : > { %3450 = vmatprep.mubr.msk.bf16.mxu1 %vm3449_vm11, %v4182_v50  ;;  %v3476_v22 = vadd.f32 %v3475_v19, %v3474_v14  ;;  %v3497_v23 = vpop.f32.mrf.mxu1  ;;  %3768 = vmatprep.subr.bf16.mxu0 %v4088_v44 }
 0x15c   : > { %v3498_v25 = vadd.f32 %v3497_v23, %v3496_v16  ;;  %3790 = vmatprep.subr.bf16.mxu1 %v4089_v47  ;;  %v3477_v26 = vpop.f32.mrf.mxu0 }
 0x15d   : > { %v3499_v27 = vpop.f32.mrf.mxu1  ;;  %3769 = vmatpush3.bf16.msra.mxu0 %v4090_v17 }
 0x15e   : > { %v962_v30 = vadd.f32 %v3498_v25, %v3476_v22  ;;  %3791 = vmatpush3.bf16.msra.mxu1 %v4091_v20  ;;  %v3478_v31 = vpop.f32.mrf.mxu0  ;;  %3770 = vmatprep.subr.bf16.mxu0 %v4092_v21 }
 0x15f   : > { %v3500_v18 = vpop.f32.mrf.mxu1  ;;  %3792 = vmatprep.subr.bf16.mxu1 %v4093_v24 }
 0x161   : > { %3771 = vmatpush3.bf16.msra.mxu0 %v4094_v28 }
 0x162   : > { %3793 = vmatpush3.bf16.msra.mxu1 %v4095_v32  ;;  %3772 = vmatprep.subr.bf16.mxu0 %v4096_v33 }
 0x163   : > { %3794 = vmatprep.subr.bf16.mxu1 %v4097_v34 }
 0x165   : > { %3773 = vmatpush3.bf16.msra.mxu0 %v4098_v35 }
 0x166   : > { %3795 = vmatpush3.bf16.msra.mxu1 %v4099_v36  ;;  %3774 = vmatprep.subr.bf16.mxu0 %v4100_v37 }
 0x167   : > { %3796 = vmatprep.subr.bf16.mxu1 %v4101_v38 }
 0x169   : > { %3775 = vmatpush3.bf16.msra.mxu0 %v4102_v45 }
 0x16a   : > { %3797 = vmatpush3.bf16.msra.mxu1 %v4103_v46  ;;  %3776 = vmatprep.subr.bf16.mxu0 %v4104_v48 }
 0x16b   : > { %3798 = vmatprep.subr.bf16.mxu1 %v4105_v49 }
 0x16d   : > { %3777 = vmatpush3.bf16.msra.mxu0 %v4106_v41 }
 0x16e   : > { %3799 = vmatpush3.bf16.msra.mxu1 %v4107_v29  ;;  %3778 = vmatprep.subr.bf16.mxu0 %v4108_v42 }
 0x16f   : > { %3800 = vmatprep.subr.bf16.mxu1 %v4109_v51 }
 0x171   : > { %3779 = vmatpush3.bf16.msra.mxu0 %v4110_v52 }
 0x172   : > { %3801 = vmatpush3.bf16.msra.mxu1 %v4111_v53  ;;  %3780 = vmatprep.subr.bf16.mxu0 %v4112_v54 }
 0x173   : > { %3802 = vmatprep.subr.bf16.mxu1 %v4113_v55 }
 0x175   : > { %3781 = vmatpush3.bf16.msra.mxu0 %v4114_v56 }
 0x176   : > { %3803 = vmatpush3.bf16.msra.mxu1 %v4115_v57 }
 0x178   : > { %v3518_v58 = vpop.f32.mrf.mxu0  ;;  %3448 = vmatmul.mubr.msk.bf16.vlgmr.msra.gmra.mxu0 %vm3447_vm14, %v4182_v50 }
 0x179   : > { %v3540_v59 = vpop.f32.mrf.mxu1  ;;  %3452 = vmatmul.mubr.msk.bf16.vlgmr.msra.gmra.mxu1 %vm3451_vm15, %v4182_v50 }
 0x17a   : > { %v3519_v60 = vpop.f32.mrf.mxu0 }
 0x17b   : > { %v3520_v61 = vadd.f32 %v3519_v60, %v3518_v58  ;;  %v3541_v62 = vpop.f32.mrf.mxu1 }
 0x17c   : > { %v3542_v63 = vadd.f32 %v3541_v62, %v3540_v59  ;;  %v3521_v0 = vpop.f32.mrf.mxu0 }
 0x17d   : > { %v1002_v1 = vadd.f32 %v3520_v61, %v962_v30  ;;  %v3543_v13 = vpop.f32.mrf.mxu1 }
 0x17e   : > { %v3522_v2 = vpop.f32.mrf.mxu0 }
 0x17f   : > { %v1042_v3 = vadd.f32 %v3542_v63, %v1002_v1  ;;  %v3544_v4 = vpop.f32.mrf.mxu1 }
 0x198   : > { %v3562_v15 = vpop.f32.mrf.mxu0 }
 0x199   : > { %v3584_v39 = vpop.f32.mrf.mxu1 }
 0x19a   : > { %v3563_v5 = vpop.f32.mrf.mxu0 }
 0x19b   : > { %v3564_v6 = vadd.f32 %v3563_v5, %v3562_v15  ;;  %v3585_v7 = vpop.f32.mrf.mxu1 }
 0x19c   : > { %v3586_v8 = vadd.f32 %v3585_v7, %v3584_v39  ;;  %v3565_v9 = vpop.f32.mrf.mxu0 }
 0x19d   : > { %v1466_v10 = vadd.f32 %v3564_v6, %v1042_v3  ;;  %v3587_v11 = vpop.f32.mrf.mxu1 }
 0x19e   : > { %v3566_v50 = vpop.f32.mrf.mxu0  ;;  %v3453_v11 = vld [vmem:[%s5204_s2] ss:$0 sm:$0xff] }
 0x19f   : > { %v1506_v12 = vadd.f32 %v3586_v8, %v1466_v10  ;;  %v3588_v40 = vpop.f32.mrf.mxu1 }
 0x1b8   : > { %v3606_v43 = vpop.f32.mrf.mxu0 }
 0x1b9   : > { %v3628_v44 = vpop.f32.mrf.mxu1 }
 0x1ba   : > { %v3607_v14 = vpop.f32.mrf.mxu0 }
 0x1bb   : > { %v3608_v47 = vadd.f32 %v3607_v14, %v3606_v43  ;;  %v3629_v16 = vpop.f32.mrf.mxu1 }
 0x1bc   : > { %v3630_v17 = vadd.f32 %v3629_v16, %v3628_v44  ;;  %v3609_v19 = vpop.f32.mrf.mxu0 }
 0x1bd   : > { %v1546_v20 = vadd.f32 %v3608_v47, %v1506_v12  ;;  %v3631_v21 = vpop.f32.mrf.mxu1 }
 0x1be   : > { %v3610_v22 = vpop.f32.mrf.mxu0 }
 0x1bf   : > { %v1586_v23 = vadd.f32 %v3630_v17, %v1546_v20  ;;  %v3632_v24 = vpop.f32.mrf.mxu1 }
 0x1d8   : > { %v3650_v25 = vpop.f32.mrf.mxu0 }
 0x1d9   : > { %v3672_v26 = vpop.f32.mrf.mxu1 }
 0x1da   : > { %v3651_v27 = vpop.f32.mrf.mxu0 }
 0x1db   : > { %v3652_v28 = vadd.f32 %v3651_v27, %v3650_v25  ;;  %v3673_v30 = vpop.f32.mrf.mxu1 }
 0x1dc   : > { %v3674_v31 = vadd.f32 %v3673_v30, %v3672_v26  ;;  %v3653_v32 = vpop.f32.mrf.mxu0 }
 0x1dd   : > { %v3675_v33 = vpop.f32.mrf.mxu1 }
 0x1de   : > { %v2213_v18 = vadd.f32 %v3674_v31, %v3652_v28  ;;  %v3654_v34 = vpop.f32.mrf.mxu0 }
 0x1df   : > { %v3676_v35 = vpop.f32.mrf.mxu1 }
 0x1f8   : > { %v3694_v36 = vpop.f32.mrf.mxu0 }
 0x1f9   : > { %v3716_v37 = vpop.f32.mrf.mxu1 }
 0x1fa   : > { %v3695_v38 = vpop.f32.mrf.mxu0 }
 0x1fb   : > { %v3696_v45 = vadd.f32 %v3695_v38, %v3694_v36  ;;  %v3717_v46 = vpop.f32.mrf.mxu1 }
 0x1fc   : > { %v3697_v48 = vpop.f32.mrf.mxu0  ;;  %v3718_v41 = vadd.f32 %v3717_v46, %v3716_v37 }
 0x1fd   : > { %v2253_v49 = vadd.f32 %v3696_v45, %v2213_v18  ;;  %v3719_v29 = vpop.f32.mrf.mxu1 }
 0x1fe   : > { %v3698_v42 = vpop.f32.mrf.mxu0 }
 0x1ff   : > { %v2293_v51 = vadd.f32 %v3718_v41, %v2253_v49  ;;  %v3720_v52 = vpop.f32.mrf.mxu1 }
 0x201   : > { %v2298_v53 = vadd.f32 %v2293_v51, %v1586_v23 }
 0x218   : > { %v3738_v54 = vpop.f32.mrf.mxu0 }
 0x219   : > { %v3760_v55 = vpop.f32.mrf.mxu1 }
 0x21a   : > { %v3739_v56 = vpop.f32.mrf.mxu0 }
 0x21b   : > { %v3761_v57 = vpop.f32.mrf.mxu1  ;;  %v3740_v62 = vadd.f32 %v3739_v56, %v3738_v54 }
 0x21c   : > { %v3741_v58 = vpop.f32.mrf.mxu0  ;;  %v3762_v63 = vadd.f32 %v3761_v57, %v3760_v55 }
 0x21d   : > { %v3763_v59 = vpop.f32.mrf.mxu1 }
 0x21e   : > { %v3742_v60 = vpop.f32.mrf.mxu0  ;;  %v2921_v2 = vadd.f32 %v3762_v63, %v3740_v62 }
 0x21f   : > { %v3764_v61 = vpop.f32.mrf.mxu1 }
 0x238   : > { %v3782_v0 = vpop.f32.mrf.mxu0 }
 0x239   : > { %v3804_v1 = vpop.f32.mrf.mxu1 }
 0x23a   : > { %v3783_v13 = vpop.f32.mrf.mxu0 }
 0x23b   : > { %v3784_v3 = vadd.f32 %v3783_v13, %v3782_v0  ;;  %v3805_v4 = vpop.f32.mrf.mxu1 }
 0x23c   : > { %v3785_v15 = vpop.f32.mrf.mxu0  ;;  %v3806_v5 = vadd.f32 %v3805_v4, %v3804_v1 }
 0x23d   : > { %v2961_v39 = vadd.f32 %v3784_v3, %v2921_v2  ;;  %v3807_v6 = vpop.f32.mrf.mxu1 }
 0x23e   : > { %v3786_v7 = vpop.f32.mrf.mxu0 }
 0x23f   : > { %v3001_v8 = vadd.f32 %v3806_v5, %v2961_v39  ;;  %v3808_v9 = vpop.f32.mrf.mxu1 }
 0x241   : > { %v3006_v10 = vadd.f32 %v3001_v8, %v2298_v53 }
 0x243   : > { %3008 = vrot.lane.b32.xlu1 %v3006_v10, %s4183_s10 }
 0x2b5   : > { %v3009_v50 = vpop.permute.xlu1 %3008 }
 0x2b6   : > { %v3011_v12 = vadd.f32 %v3009_v50, %v3006_v10 }
 0x2b8   : > { %v3019_v40 = vadd.f32 %v3453_v11, %v3011_v12 }
 0x2ba   : > { %3021 = vst.msk [vmem:[%s161_s25] sm:$0xff] %vm3020_vm0, %v3019_v40 }
 0x2bb   : > { %4129 = shalt.err (!%p4126_p3)
}
 0x2bc   : > { %s4130_s7 = scalar_lea.hbm %s3034_s29, 128  ;;  %s4134_s10 = scalar_lea.hbm %s5205_s3, 256 }
 0x2bd   : > { %p4131_p4 = scmp.ne.s32.totalorder %s3034_s29, %s4130_s7  ;;  %p4135_p9 = scmp.lt.s32.totalorder %s3034_s29, %s5205_s3 }
 0x2be   : > { %p4136_p10 = scmp.lt.s32.totalorder %s4134_s10, %s4130_s7 }
 0x2bf   : > { %p4132_p7 = pnand %p4131_p4, %p4243_p5 }
 0x2c0   : > { %p4137_p11 = por %p4136_p10, %p4135_p9 }
 0x2c1   : > { %p4133_p8 = pneg %p4132_p7 }
 0x2c3   : > { %p4138_p12 = pnand %p4137_p11, %p4133_p8 }
 0x2c5   : > { %4141 = shalt.err (!%p4138_p12)
}
 0x2c6   : > { %3810 = dma.vmem_to_hbm [thread:$0]  (%p4243_p5), %s3037_s26, 128, %s3034_s29, %s3023_s30  }
 0x2c7 PF: > { %p3816_p13 = scmp.ge.s32.totalorder %s4176_s15, 2  ;;  %s3048_s19 = sand.u32 1, %s4164_s12  }
 0x2c8   : > { %s3049_s20 = scalar_lea.sflag [#allocation3], %s3048_s19 }
 0x2c9   : > { %p3813_p0 = pnand %p3816_p13, %p4247_p6 }
 0x2cb   : > { %p3814_p1 = pneg %p3813_p0 }
 0x2cd   : > { %4159 = dma.done.wait (%p3814_p1), %s3049_s20, 128  }
 0x2ce   : > { %4161 = vsyncadd (%p3814_p1), %s3049_s20, 4294967168  ;;  %p13_p2 = scmp.ge.s32.totalorder %s4230_s18, 4   ;;  %s5210_s12 = smov %s4168_s13 }
 0x2cf   : > { %s5211_s13 = smov %s4172_s14  ;;  %s5212_s14 = smov %s4241_s21 }
 0x2d0   : > { %s5213_s15 = smov %s4230_s18  ;;  %15 = sbr.rel (!%p13_p2) target bundleno = 3 (0x3), region = 67 }
 0x2d5   :  { %3054 = vsyncpa [#allocation3], 1 }
 0x2d6   :  { %3056 = vsyncpa [#allocation3 + $0x1], 1 }

</bundles_post_ra>
